<compile_context>
chip_gen: v7x
topology: tpu7x:2x2x1
jax: 0.10.0
libtpu: 0.0.40
codegen_flags: <defaults>
</compile_context>

<pallas_src>
import functools

import jax
import jax.numpy as jnp
from jax.experimental import pallas as pl
from jax.experimental.pallas import tpu as pltpu


def _outconv_kernel(p_ref, wc_ref, wl_ref, class_ref, loc_ref):
    # p_ref:     (B*H*W, 9*Cin+1)  im2col patches with a trailing ones column
    # wc_ref:    (9*Cin+1, Cc)     classification weights, bias folded as last row
    # wl_ref:    (9*Cin+1, Cl)     localization weights, bias folded as last row
    # class_ref: (B*H*W, Cc)
    # loc_ref:   (B*H*W, Cl)
    p = p_ref[...]
    class_ref[...] = jnp.dot(
        p, wc_ref[...], preferred_element_type=jnp.float32).astype(class_ref.dtype)
    loc_ref[...] = jnp.dot(
        p, wl_ref[...], preferred_element_type=jnp.float32).astype(loc_ref.dtype)


def prepare_augmented_weights(w, b):
    """(3,3,Cin,Cout) weights + (Cout,) bias -> (9*Cin+1, Cout).

    Row order is (tap: dy-major/dx-minor, cin) — matching the im2col column
    order built in out_conv_forward — followed by one bias row.  Precompute
    this ONCE per module instance (outside the per-call path).
    """
    kh, kw, cin, cout = w.shape
    w_mat = w.reshape(kh * kw * cin, cout)
    return jnp.concatenate([w_mat, b.reshape(1, cout)], axis=0)


@functools.partial(jax.jit, static_argnames=("k",))
def out_conv_forward(x_nchw, wc_aug, wl_aug, *, k):
    """Replicates OutConv.forward.

    x_nchw: (B, Cin, H, W) float32
    wc_aug: (9*Cin+1, Cc)  classification weights with bias row (prepare_augmented_weights)
    wl_aug: (9*Cin+1, Cl)  localization weights with bias row
    Returns [loc_flattened (B, H*W*k, 4), class_flattened (B, H*W*k, num_labels+1)].
    """
    B, Cin, H, W = x_nchw.shape
    HW = H * W
    cc = wc_aug.shape[1]
    cl = wl_aug.shape[1]
    dtype = x_nchw.dtype

    # --- wrapper-side im2col in NHWC (fused under this jit) ----------------
    # Column order (tap-major, cin-minor) matches the weight row order.
    x_nhwc = jnp.transpose(x_nchw, (0, 2, 3, 1))                   # (B,H,W,Cin)
    x_pad = jnp.pad(x_nhwc, ((0, 0), (1, 1), (1, 1), (0, 0)))
    taps = [x_pad[:, dy:dy + H, dx:dx + W, :]
            for dy in range(3) for dx in range(3)]                  # 9 x (B,H,W,Cin)
    patches = jnp.concatenate(taps, axis=-1).reshape(B * HW, 9 * Cin)
    p_aug = jnp.concatenate(
        [patches, jnp.ones((B * HW, 1), dtype)], axis=-1)           # (B*HW, 9*Cin+1)

    class_out, loc_out = pl.pallas_call(
        _outconv_kernel,
        out_shape=(jax.ShapeDtypeStruct((B * HW, cc), dtype),
                   jax.ShapeDtypeStruct((B * HW, cl), dtype)),
        in_specs=[pl.BlockSpec(memory_space=pltpu.MemorySpace.VMEM)] * 3,
        out_specs=(pl.BlockSpec(memory_space=pltpu.MemorySpace.VMEM),
                   pl.BlockSpec(memory_space=pltpu.MemorySpace.VMEM)),
    )(p_aug, wc_aug, wl_aug)

    # OutConv.flatten(): (B,C,H,W) -> permute(0,2,3,1) -> view(B, H*W*k, C//k).
    # Rows of class_out/loc_out are already (b, h, w)-ordered, so pure reshapes.
    class_flat = class_out.reshape(B, HW * k, cc // k)
    loc_flat = loc_out.reshape(B, HW * k, cl // k)
    return [loc_flat, class_flat]


if __name__ == "__main__":
    # Module config (small, consistent with OutConv.__init__).
    in_channels = 4
    num_labels = 3
    k = 2
    classification_bias = -4.0

    B, H, W = 2, 16, 16
    Cc = (num_labels + 1) * k   # classification out channels
    Cl = 4 * k                  # localization out channels

    key = jax.random.PRNGKey(0)
    kx, kwc, kwl, kbl = jax.random.split(key, 4)

    x = jax.random.normal(kx, (B, in_channels, H, W), dtype=jnp.float32)

    # Deterministic "synthetic checkpoint" weights (layout (kh, kw, Cin, Cout)).
    fan_in = in_channels * 9
    scale = 1.0 / jnp.sqrt(jnp.float32(fan_in))
    wc = jax.random.uniform(kwc, (3, 3, in_channels, Cc),
                            minval=-scale, maxval=scale, dtype=jnp.float32)
    bc = jnp.full((Cc,), classification_bias, dtype=jnp.float32)  # bias.zero_().add_(cb)
    wl = jax.random.uniform(kwl, (3, 3, in_channels, Cl),
                            minval=-scale, maxval=scale, dtype=jnp.float32)
    bl = jax.random.uniform(kbl, (Cl,),
                            minval=-scale, maxval=scale, dtype=jnp.float32)

    # One-time weight prep (hoisted out of the per-call path).
    wc_aug = prepare_augmented_weights(wc, bc)
    wl_aug = prepare_augmented_weights(wl, bl)

    loc_flat, class_flat = out_conv_forward(x, wc_aug, wl_aug, k=k)
    jax.block_until_ready(loc_flat)
    jax.block_until_ready(class_flat)

    assert loc_flat.shape == (B, H * W * k, 4)
    assert class_flat.shape == (B, H * W * k, num_labels + 1)

    # Cross-check against a pure-JAX reference (lax conv, NCHW like PyTorch).
    wc_oihw = jnp.transpose(wc, (3, 2, 0, 1))
    wl_oihw = jnp.transpose(wl, (3, 2, 0, 1))

    def ref_branch(w_oihw, b, cout):
        y = jax.lax.conv_general_dilated(
            x, w_oihw, window_strides=(1, 1), padding=((1, 1), (1, 1)),
            dimension_numbers=("NCHW", "OIHW", "NCHW"))
        y = y + b.reshape(1, cout, 1, 1)
        y = jnp.transpose(y, (0, 2, 3, 1)).reshape(B, -1, cout // k)
        return y

    ref_class = ref_branch(wc_oihw, bc, Cc)
    ref_loc = ref_branch(wl_oihw, bl, Cl)
    assert jnp.allclose(class_flat, ref_class, atol=1e-4, rtol=1e-4)
    assert jnp.allclose(loc_flat, ref_loc, atol=1e-4, rtol=1e-4)

    print("KERNEL_OK")
</pallas_src>

<mosaic_0001>
module attributes {stable_mosaic.version = 11 : i64} {
  func.func @_outconv_kernel(%arg0: memref<512x37xf32, #tpu.memory_space<vmem>>, %arg1: memref<37x8xf32, #tpu.memory_space<vmem>>, %arg2: memref<37x8xf32, #tpu.memory_space<vmem>>, %arg3: memref<512x8xf32, #tpu.memory_space<vmem>>, %arg4: memref<512x8xf32, #tpu.memory_space<vmem>>) attributes {dimension_semantics = [], scalar_prefetch = 0 : i64, scratch_operands = 0 : i64, tpu.core_type = #tpu.core_type<tc>} {
    %c0 = arith.constant 0 : index
    %c0_0 = arith.constant 0 : index
    %0 = vector.load %arg0[%c0, %c0_0] : memref<512x37xf32, #tpu.memory_space<vmem>>, vector<512x37xf32>
    %c0_1 = arith.constant 0 : index
    %c0_2 = arith.constant 0 : index
    %1 = vector.load %arg1[%c0_1, %c0_2] : memref<37x8xf32, #tpu.memory_space<vmem>>, vector<37x8xf32>
    %cst = arith.constant dense<0.000000e+00> : vector<512x8xf32>
    %2 = tpu.matmul %0, %1, %cst {dimension_numbers = #tpu.dot_dimension_numbers<[1], [0], [0], [1], [0, 0, 1, 1], [], []>} : vector<512x37xf32>, vector<37x8xf32>, vector<512x8xf32> -> vector<512x8xf32>
    %c0_3 = arith.constant 0 : index
    %c0_4 = arith.constant 0 : index
    %3 = vector.load %arg3[%c0_3, %c0_4] : memref<512x8xf32, #tpu.memory_space<vmem>>, vector<512x8xf32>
    tpu.vector_store %arg3[%c0_3, %c0_4], %2 {strides = array<i32>} : memref<512x8xf32, #tpu.memory_space<vmem>>, vector<512x8xf32>,
    %c0_5 = arith.constant 0 : index
    %c0_6 = arith.constant 0 : index
    %4 = vector.load %arg2[%c0_5, %c0_6] : memref<37x8xf32, #tpu.memory_space<vmem>>, vector<37x8xf32>
    %cst_7 = arith.constant dense<0.000000e+00> : vector<512x8xf32>
    %5 = tpu.matmul %0, %4, %cst_7 {dimension_numbers = #tpu.dot_dimension_numbers<[1], [0], [0], [1], [0, 0, 1, 1], [], []>} : vector<512x37xf32>, vector<37x8xf32>, vector<512x8xf32> -> vector<512x8xf32>
    %c0_8 = arith.constant 0 : index
    %c0_9 = arith.constant 0 : index
    %6 = vector.load %arg4[%c0_8, %c0_9] : memref<512x8xf32, #tpu.memory_space<vmem>>, vector<512x8xf32>
    tpu.vector_store %arg4[%c0_8, %c0_9], %5 {strides = array<i32>} : memref<512x8xf32, #tpu.memory_space<vmem>>, vector<512x8xf32>,
    return
  }
}

</mosaic_0001>

<bundles_post_ra>
// kernel: out_conv_forward.1
= control target key start
LH: loop header
LB: loop body
LE: loop exit
PB: predicated region body
PF: predicated region fallthrough
CT: control target
= control target key end

     0   :  { %vm85_vm0 = vcmask 302080   ;;  %vm278_vm1 = vcmask 1044480   ;;  %vm667_vm2 = vcmask 64512   ;;  %s2580_s1 = inlined_call_operand.vmem [shape: f32[37,8], index: 1, kind: input, shape index: {}]   ;;  %s2581_s2 = inlined_call_operand.vmem [shape: f32[37,8], index: 2, kind: input, shape index: {}]   ;;  %s2582_s0 = inlined_call_operand.vmem [shape: f32[512,37], index: 0, kind: input, shape index: {}]   ;;  %s2583_s3 = inlined_call_operand.vmem [shape: f32[512,8], index: 3, kind: output, shape index: {0}]   ;;  %s2584_s4 = inlined_call_operand.vmem [shape: f32[512,8], index: 4, kind: output, shape index: {1}]  }
   0x1   :  { %v80_v0 = vld [vmem:[%s2580_s1] sm:$0xff]  ;;  %v81_v1 = vld [vmem:[%s2580_s1 + $0x8] sm:$0xff]  ;;  %v82_v5 = vld [vmem:[%s2580_s1 + $0x10] sm:$0xff] }
   0x2   :  { %v732_v2 = vld [vmem:[%s2581_s2] sm:$0xff]  ;;  %v1677_v3 = vpack.c.bf16 %v81_v1, %v80_v0  ;;  %v733_v4 = vld [vmem:[%s2581_s2 + $0x8] sm:$0xff]  ;;  %v83_v6 = vld [vmem:[%s2580_s1 + $0x18] sm:$0xff] }
   0x3   :  { %v1685_v7 = vpack.c.bf16 %v733_v4, %v732_v2  ;;  %v1681_v8 = vpack.c.bf16 %v83_v6, %v82_v5  ;;  %v734_v9 = vld [vmem:[%s2581_s2 + $0x10] sm:$0xff]  ;;  %v735_v10 = vld [vmem:[%s2581_s2 + $0x18] sm:$0xff]  ;;  %v16_v12 = vld [vmem:[%s2582_s0] sm:$0xff] }
   0x4   :  { %1678 = vmatprep.subr.bf16.mxu0 %v1677_v3  ;;  %v1689_v11 = vpack.c.bf16 %v735_v10, %v734_v9  ;;  %v84_v13 = vld [vmem:[%s2580_s1 + $0x20] sm:$0x1f]  ;;  %1475 = vmatprep.mubr.msk.f32.mxu0 %vm85_vm0, %v16_v12  ;;  %v17_v15 = vld [vmem:[%s2582_s0 + $0x8] sm:$0xff]  ;;  %v18_v16 = vld [vmem:[%s2582_s0 + $0x10] sm:$0xff] }
   0x5   :  { %1686 = vmatprep.subr.bf16.mxu1 %v1685_v7  ;;  %1680 = vmatpush3.bf16.msra.mxu0 %v1677_v3  ;;  %v736_v14 = vld [vmem:[%s2581_s2 + $0x20] sm:$0x1f]  ;;  %v19_v17 = vld [vmem:[%s2582_s0 + $0x18] sm:$0xff]  ;;  %v21_v19 = vld [vmem:[%s2582_s0 + $0x28] sm:$0xff] }
   0x6   :  { %1688 = vmatpush3.bf16.msra.mxu1 %v1685_v7  ;;  %1682 = vmatprep.subr.bf16.mxu0 %v1681_v8  ;;  %v20_v18 = vld [vmem:[%s2582_s0 + $0x20] sm:$0xff]  ;;  %v22_v20 = vld [vmem:[%s2582_s0 + $0x30] sm:$0xff]  ;;  %v23_v21 = vld [vmem:[%s2582_s0 + $0x38] sm:$0xff] }
   0x7   :  { %1690 = vmatprep.subr.bf16.mxu1 %v1689_v11  ;;  %1581 = vmatprep.mubr.msk.f32.mxu1 %vm85_vm0, %v16_v12  ;;  %v24_v22 = vld [vmem:[%s2582_s0 + $0x40] sm:$0xff]  ;;  %v25_v23 = vld [vmem:[%s2582_s0 + $0x48] sm:$0xff]  ;;  %v26_v24 = vld [vmem:[%s2582_s0 + $0x50] sm:$0xff] }
   0x8   :  { %v27_v25 = vld [vmem:[%s2582_s0 + $0x58] sm:$0xff]  ;;  %v28_v26 = vld [vmem:[%s2582_s0 + $0x60] sm:$0xff]  ;;  %v29_v27 = vld [vmem:[%s2582_s0 + $0x68] sm:$0xff] }
   0x9   :  { %1684 = vmatpush3.bf16.msra.mxu0 %v1681_v8  ;;  %v30_v28 = vld [vmem:[%s2582_s0 + $0x70] sm:$0xff]  ;;  %v31_v29 = vld [vmem:[%s2582_s0 + $0x78] sm:$0xff]  ;;  %v32_v30 = vld [vmem:[%s2582_s0 + $0x80] sm:$0xff] }
   0xa   :  { %1692 = vmatpush3.bf16.msra.mxu1 %v1689_v11  ;;  %1473 = vmatprep.subr.msk.mxu0 %vm278_vm1, %v84_v13  ;;  %v33_v31 = vld [vmem:[%s2582_s0 + $0x88] sm:$0xff]  ;;  %v34_v32 = vld [vmem:[%s2582_s0 + $0x90] sm:$0xff]  ;;  %v35_v33 = vld [vmem:[%s2582_s0 + $0x98] sm:$0xff] }
   0xb   :  { %1579 = vmatprep.subr.msk.mxu1 %vm278_vm1, %v736_v14  ;;  %v36_v34 = vld [vmem:[%s2582_s0 + $0xa0] sm:$0xff]  ;;  %v37_v35 = vld [vmem:[%s2582_s0 + $0xa8] sm:$0xff]  ;;  %v38_v36 = vld [vmem:[%s2582_s0 + $0xb0] sm:$0xff] }
   0xc   :  { %v39_v37 = vld [vmem:[%s2582_s0 + $0xb8] sm:$0xff]  ;;  %v40_v38 = vld [vmem:[%s2582_s0 + $0xc0] sm:$0xff]  ;;  %v41_v39 = vld [vmem:[%s2582_s0 + $0xc8] sm:$0xff] }
   0xd   :  { %1474 = vmatpush3.msk.msra.mxu0 %vm278_vm1, %v84_v13  ;;  %v42_v40 = vld [vmem:[%s2582_s0 + $0xd0] sm:$0xff]  ;;  %v43_v41 = vld [vmem:[%s2582_s0 + $0xd8] sm:$0xff]  ;;  %v44_v42 = vld [vmem:[%s2582_s0 + $0xe0] sm:$0xff] }
   0xe   :  { %1580 = vmatpush3.msk.msra.mxu1 %vm278_vm1, %v736_v14  ;;  %1476 = vmatmul.mubr.msk.f32.vlgmr.msra.gmra.mrb[0].mxu0 %vm85_vm0, %v17_v15  ;;  %v45_v43 = vld [vmem:[%s2582_s0 + $0xe8] sm:$0xff]  ;;  %v46_v44 = vld [vmem:[%s2582_s0 + $0xf0] sm:$0xff]  ;;  %v47_v45 = vld [vmem:[%s2582_s0 + $0xf8] sm:$0xff] }
   0xf   :  { %1582 = vmatmul.mubr.msk.f32.vlgmr.msra.gmra.mrb[0].mxu1 %vm85_vm0, %v17_v15  ;;  %1478 = vmatprep.mubr.msk.f32.mxu0 %vm85_vm0, %v18_v16  ;;  %v48_v46 = vld [vmem:[%s2582_s0 + $0x100] sm:$0xff]  ;;  %v49_v47 = vld [vmem:[%s2582_s0 + $0x108] sm:$0xff]  ;;  %v50_v48 = vld [vmem:[%s2582_s0 + $0x110] sm:$0xff] }
  0x10   :  { %1584 = vmatprep.mubr.msk.f32.mxu1 %vm85_vm0, %v18_v16  ;;  %v51_v49 = vld [vmem:[%s2582_s0 + $0x118] sm:$0xff]  ;;  %v52_v50 = vld [vmem:[%s2582_s0 + $0x120] sm:$0xff]  ;;  %v53_v51 = vld [vmem:[%s2582_s0 + $0x128] sm:$0xff] }
  0x11   :  { %v54_v52 = vld [vmem:[%s2582_s0 + $0x130] sm:$0xff]  ;;  %v55_v53 = vld [vmem:[%s2582_s0 + $0x138] sm:$0xff]  ;;  %v56_v54 = vld [vmem:[%s2582_s0 + $0x140] sm:$0xff] }
  0x12   :  { %1479 = vmatmul.mubr.msk.f32.gmra.mrb[2].mxu0 %vm85_vm0, %v19_v17  ;;  %v57_v55 = vld [vmem:[%s2582_s0 + $0x148] sm:$0xff]  ;;  %v58_v56 = vld [vmem:[%s2582_s0 + $0x150] sm:$0xff]  ;;  %v59_v57 = vld [vmem:[%s2582_s0 + $0x158] sm:$0xff] }
  0x13   :  { %1585 = vmatmul.mubr.msk.f32.gmra.mrb[2].mxu1 %vm85_vm0, %v19_v17  ;;  %1481 = vmatprep.mubr.msk.f32.mxu0 %vm85_vm0, %v20_v18  ;;  %v60_v58 = vld [vmem:[%s2582_s0 + $0x160] sm:$0xff]  ;;  %v61_v59 = vld [vmem:[%s2582_s0 + $0x168] sm:$0xff]  ;;  %v62_v60 = vld [vmem:[%s2582_s0 + $0x170] sm:$0xff] }
  0x14   :  { %1587 = vmatprep.mubr.msk.f32.mxu1 %vm85_vm0, %v20_v18  ;;  %v63_v61 = vld [vmem:[%s2582_s0 + $0x178] sm:$0xff]  ;;  %v64_v62 = vld [vmem:[%s2582_s0 + $0x180] sm:$0xff]  ;;  %v65_v63 = vld [vmem:[%s2582_s0 + $0x188] sm:$0xff] }
  0x15   :  { %v66_v0 = vld [vmem:[%s2582_s0 + $0x190] sm:$0xff]  ;;  %v67_v1 = vld [vmem:[%s2582_s0 + $0x198] sm:$0xff]  ;;  %v68_v2 = vld [vmem:[%s2582_s0 + $0x1a0] sm:$0xff] }
  0x16   :  { %1482 = vmatmul.mubr.msk.f32.gmra.mrb[4].mxu0 %vm85_vm0, %v21_v19  ;;  %v69_v3 = vld [vmem:[%s2582_s0 + $0x1a8] sm:$0xff]  ;;  %v70_v4 = vld [vmem:[%s2582_s0 + $0x1b0] sm:$0xff]  ;;  %v71_v5 = vld [vmem:[%s2582_s0 + $0x1b8] sm:$0xff] }
  0x17   :  { %1588 = vmatmul.mubr.msk.f32.gmra.mrb[4].mxu1 %vm85_vm0, %v21_v19  ;;  %1484 = vmatprep.mubr.msk.f32.mxu0 %vm85_vm0, %v22_v20  ;;  %v72_v6 = vld [vmem:[%s2582_s0 + $0x1c0] sm:$0xff]  ;;  %v73_v7 = vld [vmem:[%s2582_s0 + $0x1c8] sm:$0xff]  ;;  %v74_v8 = vld [vmem:[%s2582_s0 + $0x1d0] sm:$0xff] }
  0x18   :  { %1590 = vmatprep.mubr.msk.f32.mxu1 %vm85_vm0, %v22_v20  ;;  %v75_v9 = vld [vmem:[%s2582_s0 + $0x1d8] sm:$0xff]  ;;  %v76_v10 = vld [vmem:[%s2582_s0 + $0x1e0] sm:$0xff]  ;;  %v77_v11 = vld [vmem:[%s2582_s0 + $0x1e8] sm:$0xff] }
  0x19   :  { %v78_v12 = vld [vmem:[%s2582_s0 + $0x1f0] sm:$0xff]  ;;  %v79_v13 = vld [vmem:[%s2582_s0 + $0x1f8] sm:$0xff] }
  0x1a   :  { %1485 = vmatmul.mubr.msk.f32.gmra.mrb[6].mxu0 %vm85_vm0, %v23_v21 }
  0x1b   :  { %1591 = vmatmul.mubr.msk.f32.gmra.mrb[6].mxu1 %vm85_vm0, %v23_v21  ;;  %1487 = vmatprep.mubr.msk.f32.mxu0 %vm85_vm0, %v24_v22 }
  0x1c   :  { %1593 = vmatprep.mubr.msk.f32.mxu1 %vm85_vm0, %v24_v22 }
  0x1e   :  { %1488 = vmatmul.mubr.msk.f32.gmra.mrb[8].mxu0 %vm85_vm0, %v25_v23 }
  0x1f   :  { %1594 = vmatmul.mubr.msk.f32.gmra.mrb[8].mxu1 %vm85_vm0, %v25_v23  ;;  %1490 = vmatprep.mubr.msk.f32.mxu0 %vm85_vm0, %v26_v24 }
  0x20   :  { %1596 = vmatprep.mubr.msk.f32.mxu1 %vm85_vm0, %v26_v24 }
  0x22   :  { %1491 = vmatmul.mubr.msk.f32.gmra.mrb[10].mxu0 %vm85_vm0, %v27_v25 }
  0x23   :  { %1597 = vmatmul.mubr.msk.f32.gmra.mrb[10].mxu1 %vm85_vm0, %v27_v25  ;;  %1493 = vmatprep.mubr.msk.f32.mxu0 %vm85_vm0, %v28_v26 }
  0x24   :  { %1599 = vmatprep.mubr.msk.f32.mxu1 %vm85_vm0, %v28_v26 }
  0x26   :  { %1494 = vmatmul.mubr.msk.f32.gmra.mrb[12].mxu0 %vm85_vm0, %v29_v27 }
  0x27   :  { %1600 = vmatmul.mubr.msk.f32.gmra.mrb[12].mxu1 %vm85_vm0, %v29_v27  ;;  %1496 = vmatprep.mubr.msk.f32.mxu0 %vm85_vm0, %v30_v28 }
  0x28   :  { %1602 = vmatprep.mubr.msk.f32.mxu1 %vm85_vm0, %v30_v28 }
  0x2a   :  { %1497 = vmatmul.mubr.msk.f32.gmra.mrb[14].mxu0 %vm85_vm0, %v31_v29 }
  0x2b   :  { %1603 = vmatmul.mubr.msk.f32.gmra.mrb[14].mxu1 %vm85_vm0, %v31_v29  ;;  %1499 = vmatprep.mubr.msk.f32.mxu0 %vm85_vm0, %v32_v30 }
  0x2c   :  { %1605 = vmatprep.mubr.msk.f32.mxu1 %vm85_vm0, %v32_v30 }
  0x2e   :  { %1500 = vmatmul.mubr.msk.f32.gmra.mrb[16].mxu0 %vm85_vm0, %v33_v31 }
  0x2f   :  { %1606 = vmatmul.mubr.msk.f32.gmra.mrb[16].mxu1 %vm85_vm0, %v33_v31  ;;  %1502 = vmatprep.mubr.msk.f32.mxu0 %vm85_vm0, %v34_v32 }
  0x30   :  { %1608 = vmatprep.mubr.msk.f32.mxu1 %vm85_vm0, %v34_v32 }
  0x32   :  { %1503 = vmatmul.mubr.msk.f32.gmra.mrb[18].mxu0 %vm85_vm0, %v35_v33 }
  0x33   :  { %1609 = vmatmul.mubr.msk.f32.gmra.mrb[18].mxu1 %vm85_vm0, %v35_v33  ;;  %1505 = vmatprep.mubr.msk.f32.mxu0 %vm85_vm0, %v36_v34 }
  0x34   :  { %1611 = vmatprep.mubr.msk.f32.mxu1 %vm85_vm0, %v36_v34 }
  0x36   :  { %1506 = vmatmul.mubr.msk.f32.gmra.mrb[20].mxu0 %vm85_vm0, %v37_v35 }
  0x37   :  { %1612 = vmatmul.mubr.msk.f32.gmra.mrb[20].mxu1 %vm85_vm0, %v37_v35  ;;  %1508 = vmatprep.mubr.msk.f32.mxu0 %vm85_vm0, %v38_v36 }
  0x38   :  { %1614 = vmatprep.mubr.msk.f32.mxu1 %vm85_vm0, %v38_v36 }
  0x3a   :  { %1509 = vmatmul.mubr.msk.f32.gmra.mrb[22].mxu0 %vm85_vm0, %v39_v37 }
  0x3b   :  { %1615 = vmatmul.mubr.msk.f32.gmra.mrb[22].mxu1 %vm85_vm0, %v39_v37  ;;  %1511 = vmatprep.mubr.msk.f32.mxu0 %vm85_vm0, %v40_v38 }
  0x3c   :  { %1617 = vmatprep.mubr.msk.f32.mxu1 %vm85_vm0, %v40_v38 }
  0x3e   :  { %1512 = vmatmul.mubr.msk.f32.gmra.mrb[24].mxu0 %vm85_vm0, %v41_v39 }
  0x3f   :  { %1618 = vmatmul.mubr.msk.f32.gmra.mrb[24].mxu1 %vm85_vm0, %v41_v39  ;;  %1514 = vmatprep.mubr.msk.f32.mxu0 %vm85_vm0, %v42_v40 }
  0x40   :  { %1620 = vmatprep.mubr.msk.f32.mxu1 %vm85_vm0, %v42_v40 }
  0x42   :  { %1515 = vmatmul.mubr.msk.f32.gmra.mrb[26].mxu0 %vm85_vm0, %v43_v41 }
  0x43   :  { %1621 = vmatmul.mubr.msk.f32.gmra.mrb[26].mxu1 %vm85_vm0, %v43_v41  ;;  %1517 = vmatprep.mubr.msk.f32.mxu0 %vm85_vm0, %v44_v42 }
  0x44   :  { %1623 = vmatprep.mubr.msk.f32.mxu1 %vm85_vm0, %v44_v42 }
  0x46   :  { %1518 = vmatmul.mubr.msk.f32.gmra.mrb[28].mxu0 %vm85_vm0, %v45_v43 }
  0x47   :  { %1624 = vmatmul.mubr.msk.f32.gmra.mrb[28].mxu1 %vm85_vm0, %v45_v43  ;;  %1520 = vmatprep.mubr.msk.f32.mxu0 %vm85_vm0, %v46_v44 }
  0x48   :  { %1626 = vmatprep.mubr.msk.f32.mxu1 %vm85_vm0, %v46_v44 }
  0x4a   :  { %1521 = vmatmul.mubr.msk.f32.gmra.mrb[30].mxu0 %vm85_vm0, %v47_v45 }
  0x4b   :  { %1627 = vmatmul.mubr.msk.f32.gmra.mrb[30].mxu1 %vm85_vm0, %v47_v45  ;;  %1523 = vmatprep.mubr.msk.f32.mxu0 %vm85_vm0, %v48_v46 }
  0x4c   :  { %1629 = vmatprep.mubr.msk.f32.mxu1 %vm85_vm0, %v48_v46 }
  0x4e   :  { %1524 = vmatmul.mubr.msk.f32.gmra.mrb[32].mxu0 %vm85_vm0, %v49_v47 }
  0x4f   :  { %1630 = vmatmul.mubr.msk.f32.gmra.mrb[32].mxu1 %vm85_vm0, %v49_v47  ;;  %1526 = vmatprep.mubr.msk.f32.mxu0 %vm85_vm0, %v50_v48 }
  0x50   :  { %1632 = vmatprep.mubr.msk.f32.mxu1 %vm85_vm0, %v50_v48 }
  0x52   :  { %1527 = vmatmul.mubr.msk.f32.gmra.mrb[34].mxu0 %vm85_vm0, %v51_v49 }
  0x53   :  { %1633 = vmatmul.mubr.msk.f32.gmra.mrb[34].mxu1 %vm85_vm0, %v51_v49  ;;  %1529 = vmatprep.mubr.msk.f32.mxu0 %vm85_vm0, %v52_v50 }
  0x54   :  { %1635 = vmatprep.mubr.msk.f32.mxu1 %vm85_vm0, %v52_v50 }
  0x56   :  { %1530 = vmatmul.mubr.msk.f32.gmra.mrb[36].mxu0 %vm85_vm0, %v53_v51 }
  0x57   :  { %1636 = vmatmul.mubr.msk.f32.gmra.mrb[36].mxu1 %vm85_vm0, %v53_v51  ;;  %1532 = vmatprep.mubr.msk.f32.mxu0 %vm85_vm0, %v54_v52 }
  0x58   :  { %1638 = vmatprep.mubr.msk.f32.mxu1 %vm85_vm0, %v54_v52 }
  0x5a   :  { %1533 = vmatmul.mubr.msk.f32.gmra.mrb[38].mxu0 %vm85_vm0, %v55_v53 }
  0x5b   :  { %1639 = vmatmul.mubr.msk.f32.gmra.mrb[38].mxu1 %vm85_vm0, %v55_v53  ;;  %1535 = vmatprep.mubr.msk.f32.mxu0 %vm85_vm0, %v56_v54 }
  0x5c   :  { %1641 = vmatprep.mubr.msk.f32.mxu1 %vm85_vm0, %v56_v54 }
  0x5e   :  { %1536 = vmatmul.mubr.msk.f32.gmra.mrb[40].mxu0 %vm85_vm0, %v57_v55 }
  0x5f   :  { %1642 = vmatmul.mubr.msk.f32.gmra.mrb[40].mxu1 %vm85_vm0, %v57_v55  ;;  %1538 = vmatprep.mubr.msk.f32.mxu0 %vm85_vm0, %v58_v56 }
  0x60   :  { %1644 = vmatprep.mubr.msk.f32.mxu1 %vm85_vm0, %v58_v56 }
  0x62   :  { %1539 = vmatmul.mubr.msk.f32.gmra.mrb[42].mxu0 %vm85_vm0, %v59_v57 }
  0x63   :  { %1645 = vmatmul.mubr.msk.f32.gmra.mrb[42].mxu1 %vm85_vm0, %v59_v57  ;;  %1541 = vmatprep.mubr.msk.f32.mxu0 %vm85_vm0, %v60_v58 }
  0x64   :  { %1647 = vmatprep.mubr.msk.f32.mxu1 %vm85_vm0, %v60_v58 }
  0x66   :  { %1542 = vmatmul.mubr.msk.f32.gmra.mrb[44].mxu0 %vm85_vm0, %v61_v59 }
  0x67   :  { %1648 = vmatmul.mubr.msk.f32.gmra.mrb[44].mxu1 %vm85_vm0, %v61_v59  ;;  %1544 = vmatprep.mubr.msk.f32.mxu0 %vm85_vm0, %v62_v60 }
  0x68   :  { %1650 = vmatprep.mubr.msk.f32.mxu1 %vm85_vm0, %v62_v60 }
  0x6a   :  { %1545 = vmatmul.mubr.msk.f32.gmra.mrb[46].mxu0 %vm85_vm0, %v63_v61 }
  0x6b   :  { %1651 = vmatmul.mubr.msk.f32.gmra.mrb[46].mxu1 %vm85_vm0, %v63_v61  ;;  %1547 = vmatprep.mubr.msk.f32.mxu0 %vm85_vm0, %v64_v62 }
  0x6c   :  { %1653 = vmatprep.mubr.msk.f32.mxu1 %vm85_vm0, %v64_v62 }
  0x6e   :  { %1548 = vmatmul.mubr.msk.f32.gmra.mrb[48].mxu0 %vm85_vm0, %v65_v63 }
  0x6f   :  { %1654 = vmatmul.mubr.msk.f32.gmra.mrb[48].mxu1 %vm85_vm0, %v65_v63  ;;  %1550 = vmatprep.mubr.msk.f32.mxu0 %vm85_vm0, %v66_v0 }
  0x70   :  { %1656 = vmatprep.mubr.msk.f32.mxu1 %vm85_vm0, %v66_v0 }
  0x72   :  { %1551 = vmatmul.mubr.msk.f32.gmra.mrb[50].mxu0 %vm85_vm0, %v67_v1 }
  0x73   :  { %1657 = vmatmul.mubr.msk.f32.gmra.mrb[50].mxu1 %vm85_vm0, %v67_v1  ;;  %1553 = vmatprep.mubr.msk.f32.mxu0 %vm85_vm0, %v68_v2 }
  0x74   :  { %1659 = vmatprep.mubr.msk.f32.mxu1 %vm85_vm0, %v68_v2 }
  0x76   :  { %1554 = vmatmul.mubr.msk.f32.gmra.mrb[52].mxu0 %vm85_vm0, %v69_v3 }
  0x77   :  { %1660 = vmatmul.mubr.msk.f32.gmra.mrb[52].mxu1 %vm85_vm0, %v69_v3  ;;  %1556 = vmatprep.mubr.msk.f32.mxu0 %vm85_vm0, %v70_v4 }
  0x78   :  { %1662 = vmatprep.mubr.msk.f32.mxu1 %vm85_vm0, %v70_v4 }
  0x7a   :  { %1557 = vmatmul.mubr.msk.f32.gmra.mrb[54].mxu0 %vm85_vm0, %v71_v5 }
  0x7b   :  { %1663 = vmatmul.mubr.msk.f32.gmra.mrb[54].mxu1 %vm85_vm0, %v71_v5  ;;  %1559 = vmatprep.mubr.msk.f32.mxu0 %vm85_vm0, %v72_v6 }
  0x7c   :  { %1665 = vmatprep.mubr.msk.f32.mxu1 %vm85_vm0, %v72_v6 }
  0x7e   :  { %1560 = vmatmul.mubr.msk.f32.gmra.mrb[56].mxu0 %vm85_vm0, %v73_v7 }
  0x7f   :  { %1666 = vmatmul.mubr.msk.f32.gmra.mrb[56].mxu1 %vm85_vm0, %v73_v7  ;;  %1562 = vmatprep.mubr.msk.f32.mxu0 %vm85_vm0, %v74_v8 }
  0x80   :  { %1668 = vmatprep.mubr.msk.f32.mxu1 %vm85_vm0, %v74_v8 }
  0x82   :  { %1563 = vmatmul.mubr.msk.f32.gmra.mrb[58].mxu0 %vm85_vm0, %v75_v9 }
  0x83   :  { %1669 = vmatmul.mubr.msk.f32.gmra.mrb[58].mxu1 %vm85_vm0, %v75_v9  ;;  %1565 = vmatprep.mubr.msk.f32.mxu0 %vm85_vm0, %v76_v10 }
  0x84   :  { %1671 = vmatprep.mubr.msk.f32.mxu1 %vm85_vm0, %v76_v10 }
  0x86   :  { %1566 = vmatmul.mubr.msk.f32.gmra.mrb[60].mxu0 %vm85_vm0, %v77_v11 }
  0x87   :  { %1672 = vmatmul.mubr.msk.f32.gmra.mrb[60].mxu1 %vm85_vm0, %v77_v11  ;;  %1568 = vmatprep.mubr.msk.f32.mxu0 %vm85_vm0, %v78_v12 }
  0x88   :  { %1674 = vmatprep.mubr.msk.f32.mxu1 %vm85_vm0, %v78_v12 }
  0x8a   :  { %1569 = vmatmul.mubr.msk.f32.gmra.mrb[62].mxu0 %vm85_vm0, %v79_v13 }
  0x8b   :  { %1675 = vmatmul.mubr.msk.f32.gmra.mrb[62].mxu1 %vm85_vm0, %v79_v13 }
  0xe1   :  { %v1477_v14 = vpop.f32.mrb[0].mxu0 }
  0xe2   :  { %669 = vst.msk [vmem:[%s2583_s3 + $0x8] sm:$0xff] %vm667_vm2, %v1477_v14  ;;  %v1583_v15 = vpop.f32.mrb[0].mxu1  ;;  %v348_v16 = vpop.f32.mrb[1].mxu0 }
  0xe3   :  { %1126 = vst.msk [vmem:[%s2584_s4 + $0x8] sm:$0xff] %vm667_vm2, %v1583_v15  ;;  %668 = vst.msk [vmem:[%s2583_s3] sm:$0xff] %vm667_vm2, %v348_v16  ;;  %v806_v17 = vpop.f32.mrb[1].mxu1 }
  0xe4   :  { %1125 = vst.msk [vmem:[%s2584_s4] sm:$0xff] %vm667_vm2, %v806_v17 }
  0xe5   :  { %v1480_v18 = vpop.f32.mrb[2].mxu0 }
  0xe6   :  { %671 = vst.msk [vmem:[%s2583_s3 + $0x18] sm:$0xff] %vm667_vm2, %v1480_v18  ;;  %v1586_v19 = vpop.f32.mrb[2].mxu1  ;;  %v358_v20 = vpop.f32.mrb[3].mxu0 }
  0xe7   :  { %1128 = vst.msk [vmem:[%s2584_s4 + $0x18] sm:$0xff] %vm667_vm2, %v1586_v19  ;;  %670 = vst.msk [vmem:[%s2583_s3 + $0x10] sm:$0xff] %vm667_vm2, %v358_v20  ;;  %v816_v21 = vpop.f32.mrb[3].mxu1 }
  0xe8   :  { %1127 = vst.msk [vmem:[%s2584_s4 + $0x10] sm:$0xff] %vm667_vm2, %v816_v21 }
  0xe9   :  { %v1483_v22 = vpop.f32.mrb[4].mxu0 }
  0xea   :  { %673 = vst.msk [vmem:[%s2583_s3 + $0x28] sm:$0xff] %vm667_vm2, %v1483_v22  ;;  %v1589_v23 = vpop.f32.mrb[4].mxu1  ;;  %v368_v24 = vpop.f32.mrb[5].mxu0 }
  0xeb   :  { %1130 = vst.msk [vmem:[%s2584_s4 + $0x28] sm:$0xff] %vm667_vm2, %v1589_v23  ;;  %672 = vst.msk [vmem:[%s2583_s3 + $0x20] sm:$0xff] %vm667_vm2, %v368_v24  ;;  %v826_v25 = vpop.f32.mrb[5].mxu1 }
  0xec   :  { %1129 = vst.msk [vmem:[%s2584_s4 + $0x20] sm:$0xff] %vm667_vm2, %v826_v25 }
  0xed   :  { %v1486_v26 = vpop.f32.mrb[6].mxu0 }
  0xee   :  { %675 = vst.msk [vmem:[%s2583_s3 + $0x38] sm:$0xff] %vm667_vm2, %v1486_v26  ;;  %v1592_v27 = vpop.f32.mrb[6].mxu1  ;;  %v378_v28 = vpop.f32.mrb[7].mxu0 }
  0xef   :  { %1132 = vst.msk [vmem:[%s2584_s4 + $0x38] sm:$0xff] %vm667_vm2, %v1592_v27  ;;  %674 = vst.msk [vmem:[%s2583_s3 + $0x30] sm:$0xff] %vm667_vm2, %v378_v28  ;;  %v836_v29 = vpop.f32.mrb[7].mxu1 }
  0xf0   :  { %1131 = vst.msk [vmem:[%s2584_s4 + $0x30] sm:$0xff] %vm667_vm2, %v836_v29 }
  0xf1   :  { %v1489_v30 = vpop.f32.mrb[8].mxu0 }
  0xf2   :  { %677 = vst.msk [vmem:[%s2583_s3 + $0x48] sm:$0xff] %vm667_vm2, %v1489_v30  ;;  %v1595_v31 = vpop.f32.mrb[8].mxu1  ;;  %v388_v32 = vpop.f32.mrb[9].mxu0 }
  0xf3   :  { %1134 = vst.msk [vmem:[%s2584_s4 + $0x48] sm:$0xff] %vm667_vm2, %v1595_v31  ;;  %676 = vst.msk [vmem:[%s2583_s3 + $0x40] sm:$0xff] %vm667_vm2, %v388_v32  ;;  %v846_v33 = vpop.f32.mrb[9].mxu1 }
  0xf4   :  { %1133 = vst.msk [vmem:[%s2584_s4 + $0x40] sm:$0xff] %vm667_vm2, %v846_v33 }
  0xf5   :  { %v1492_v34 = vpop.f32.mrb[10].mxu0 }
  0xf6   :  { %679 = vst.msk [vmem:[%s2583_s3 + $0x58] sm:$0xff] %vm667_vm2, %v1492_v34  ;;  %v1598_v35 = vpop.f32.mrb[10].mxu1  ;;  %v398_v36 = vpop.f32.mrb[11].mxu0 }
  0xf7   :  { %1136 = vst.msk [vmem:[%s2584_s4 + $0x58] sm:$0xff] %vm667_vm2, %v1598_v35  ;;  %678 = vst.msk [vmem:[%s2583_s3 + $0x50] sm:$0xff] %vm667_vm2, %v398_v36  ;;  %v856_v37 = vpop.f32.mrb[11].mxu1 }
  0xf8   :  { %1135 = vst.msk [vmem:[%s2584_s4 + $0x50] sm:$0xff] %vm667_vm2, %v856_v37 }
  0xf9   :  { %v1495_v38 = vpop.f32.mrb[12].mxu0 }
  0xfa   :  { %681 = vst.msk [vmem:[%s2583_s3 + $0x68] sm:$0xff] %vm667_vm2, %v1495_v38  ;;  %v1601_v39 = vpop.f32.mrb[12].mxu1  ;;  %v408_v40 = vpop.f32.mrb[13].mxu0 }
  0xfb   :  { %1138 = vst.msk [vmem:[%s2584_s4 + $0x68] sm:$0xff] %vm667_vm2, %v1601_v39  ;;  %680 = vst.msk [vmem:[%s2583_s3 + $0x60] sm:$0xff] %vm667_vm2, %v408_v40  ;;  %v866_v41 = vpop.f32.mrb[13].mxu1 }
  0xfc   :  { %1137 = vst.msk [vmem:[%s2584_s4 + $0x60] sm:$0xff] %vm667_vm2, %v866_v41 }
  0xfd   :  { %v1498_v42 = vpop.f32.mrb[14].mxu0 }
  0xfe   :  { %683 = vst.msk [vmem:[%s2583_s3 + $0x78] sm:$0xff] %vm667_vm2, %v1498_v42  ;;  %v1604_v43 = vpop.f32.mrb[14].mxu1  ;;  %v418_v44 = vpop.f32.mrb[15].mxu0 }
  0xff   :  { %1140 = vst.msk [vmem:[%s2584_s4 + $0x78] sm:$0xff] %vm667_vm2, %v1604_v43  ;;  %682 = vst.msk [vmem:[%s2583_s3 + $0x70] sm:$0xff] %vm667_vm2, %v418_v44  ;;  %v876_v45 = vpop.f32.mrb[15].mxu1 }
 0x100   :  { %1139 = vst.msk [vmem:[%s2584_s4 + $0x70] sm:$0xff] %vm667_vm2, %v876_v45 }
 0x101   :  { %v1501_v46 = vpop.f32.mrb[16].mxu0 }
 0x102   :  { %685 = vst.msk [vmem:[%s2583_s3 + $0x88] sm:$0xff] %vm667_vm2, %v1501_v46  ;;  %v1607_v47 = vpop.f32.mrb[16].mxu1  ;;  %v428_v48 = vpop.f32.mrb[17].mxu0 }
 0x103   :  { %1142 = vst.msk [vmem:[%s2584_s4 + $0x88] sm:$0xff] %vm667_vm2, %v1607_v47  ;;  %684 = vst.msk [vmem:[%s2583_s3 + $0x80] sm:$0xff] %vm667_vm2, %v428_v48  ;;  %v886_v49 = vpop.f32.mrb[17].mxu1 }
 0x104   :  { %1141 = vst.msk [vmem:[%s2584_s4 + $0x80] sm:$0xff] %vm667_vm2, %v886_v49 }
 0x105   :  { %v1504_v50 = vpop.f32.mrb[18].mxu0 }
 0x106   :  { %687 = vst.msk [vmem:[%s2583_s3 + $0x98] sm:$0xff] %vm667_vm2, %v1504_v50  ;;  %v1610_v51 = vpop.f32.mrb[18].mxu1  ;;  %v438_v52 = vpop.f32.mrb[19].mxu0 }
 0x107   :  { %1144 = vst.msk [vmem:[%s2584_s4 + $0x98] sm:$0xff] %vm667_vm2, %v1610_v51  ;;  %686 = vst.msk [vmem:[%s2583_s3 + $0x90] sm:$0xff] %vm667_vm2, %v438_v52  ;;  %v896_v53 = vpop.f32.mrb[19].mxu1 }
 0x108   :  { %1143 = vst.msk [vmem:[%s2584_s4 + $0x90] sm:$0xff] %vm667_vm2, %v896_v53 }
 0x109   :  { %v1507_v54 = vpop.f32.mrb[20].mxu0 }
 0x10a   :  { %689 = vst.msk [vmem:[%s2583_s3 + $0xa8] sm:$0xff] %vm667_vm2, %v1507_v54  ;;  %v1613_v55 = vpop.f32.mrb[20].mxu1  ;;  %v448_v56 = vpop.f32.mrb[21].mxu0 }
 0x10b   :  { %1146 = vst.msk [vmem:[%s2584_s4 + $0xa8] sm:$0xff] %vm667_vm2, %v1613_v55  ;;  %688 = vst.msk [vmem:[%s2583_s3 + $0xa0] sm:$0xff] %vm667_vm2, %v448_v56  ;;  %v906_v57 = vpop.f32.mrb[21].mxu1 }
 0x10c   :  { %1145 = vst.msk [vmem:[%s2584_s4 + $0xa0] sm:$0xff] %vm667_vm2, %v906_v57 }
 0x10d   :  { %v1510_v58 = vpop.f32.mrb[22].mxu0 }
 0x10e   :  { %691 = vst.msk [vmem:[%s2583_s3 + $0xb8] sm:$0xff] %vm667_vm2, %v1510_v58  ;;  %v1616_v59 = vpop.f32.mrb[22].mxu1  ;;  %v458_v60 = vpop.f32.mrb[23].mxu0 }
 0x10f   :  { %1148 = vst.msk [vmem:[%s2584_s4 + $0xb8] sm:$0xff] %vm667_vm2, %v1616_v59  ;;  %690 = vst.msk [vmem:[%s2583_s3 + $0xb0] sm:$0xff] %vm667_vm2, %v458_v60  ;;  %v916_v61 = vpop.f32.mrb[23].mxu1 }
 0x110   :  { %1147 = vst.msk [vmem:[%s2584_s4 + $0xb0] sm:$0xff] %vm667_vm2, %v916_v61 }
 0x111   :  { %v1513_v62 = vpop.f32.mrb[24].mxu0 }
 0x112   :  { %693 = vst.msk [vmem:[%s2583_s3 + $0xc8] sm:$0xff] %vm667_vm2, %v1513_v62  ;;  %v1619_v63 = vpop.f32.mrb[24].mxu1  ;;  %v468_v0 = vpop.f32.mrb[25].mxu0 }
 0x113   :  { %1150 = vst.msk [vmem:[%s2584_s4 + $0xc8] sm:$0xff] %vm667_vm2, %v1619_v63  ;;  %692 = vst.msk [vmem:[%s2583_s3 + $0xc0] sm:$0xff] %vm667_vm2, %v468_v0  ;;  %v926_v1 = vpop.f32.mrb[25].mxu1 }
 0x114   :  { %1149 = vst.msk [vmem:[%s2584_s4 + $0xc0] sm:$0xff] %vm667_vm2, %v926_v1 }
 0x115   :  { %v1516_v2 = vpop.f32.mrb[26].mxu0 }
 0x116   :  { %695 = vst.msk [vmem:[%s2583_s3 + $0xd8] sm:$0xff] %vm667_vm2, %v1516_v2  ;;  %v1622_v3 = vpop.f32.mrb[26].mxu1  ;;  %v478_v4 = vpop.f32.mrb[27].mxu0 }
 0x117   :  { %1152 = vst.msk [vmem:[%s2584_s4 + $0xd8] sm:$0xff] %vm667_vm2, %v1622_v3  ;;  %694 = vst.msk [vmem:[%s2583_s3 + $0xd0] sm:$0xff] %vm667_vm2, %v478_v4  ;;  %v936_v5 = vpop.f32.mrb[27].mxu1 }
 0x118   :  { %1151 = vst.msk [vmem:[%s2584_s4 + $0xd0] sm:$0xff] %vm667_vm2, %v936_v5 }
 0x119   :  { %v1519_v6 = vpop.f32.mrb[28].mxu0 }
 0x11a   :  { %697 = vst.msk [vmem:[%s2583_s3 + $0xe8] sm:$0xff] %vm667_vm2, %v1519_v6  ;;  %v1625_v7 = vpop.f32.mrb[28].mxu1  ;;  %v488_v8 = vpop.f32.mrb[29].mxu0 }
 0x11b   :  { %1154 = vst.msk [vmem:[%s2584_s4 + $0xe8] sm:$0xff] %vm667_vm2, %v1625_v7  ;;  %696 = vst.msk [vmem:[%s2583_s3 + $0xe0] sm:$0xff] %vm667_vm2, %v488_v8  ;;  %v946_v9 = vpop.f32.mrb[29].mxu1 }
 0x11c   :  { %1153 = vst.msk [vmem:[%s2584_s4 + $0xe0] sm:$0xff] %vm667_vm2, %v946_v9 }
 0x11d   :  { %v1522_v10 = vpop.f32.mrb[30].mxu0 }
 0x11e   :  { %699 = vst.msk [vmem:[%s2583_s3 + $0xf8] sm:$0xff] %vm667_vm2, %v1522_v10  ;;  %v1628_v11 = vpop.f32.mrb[30].mxu1  ;;  %v498_v12 = vpop.f32.mrb[31].mxu0 }
 0x11f   :  { %1156 = vst.msk [vmem:[%s2584_s4 + $0xf8] sm:$0xff] %vm667_vm2, %v1628_v11  ;;  %698 = vst.msk [vmem:[%s2583_s3 + $0xf0] sm:$0xff] %vm667_vm2, %v498_v12  ;;  %v956_v13 = vpop.f32.mrb[31].mxu1 }
 0x120   :  { %1155 = vst.msk [vmem:[%s2584_s4 + $0xf0] sm:$0xff] %vm667_vm2, %v956_v13 }
 0x121   :  { %v1525_v14 = vpop.f32.mrb[32].mxu0 }
 0x122   :  { %701 = vst.msk [vmem:[%s2583_s3 + $0x108] sm:$0xff] %vm667_vm2, %v1525_v14  ;;  %v1631_v15 = vpop.f32.mrb[32].mxu1  ;;  %v508_v16 = vpop.f32.mrb[33].mxu0 }
 0x123   :  { %1158 = vst.msk [vmem:[%s2584_s4 + $0x108] sm:$0xff] %vm667_vm2, %v1631_v15  ;;  %700 = vst.msk [vmem:[%s2583_s3 + $0x100] sm:$0xff] %vm667_vm2, %v508_v16  ;;  %v966_v17 = vpop.f32.mrb[33].mxu1 }
 0x124   :  { %1157 = vst.msk [vmem:[%s2584_s4 + $0x100] sm:$0xff] %vm667_vm2, %v966_v17 }
 0x125   :  { %v1528_v18 = vpop.f32.mrb[34].mxu0 }
 0x126   :  { %703 = vst.msk [vmem:[%s2583_s3 + $0x118] sm:$0xff] %vm667_vm2, %v1528_v18  ;;  %v1634_v19 = vpop.f32.mrb[34].mxu1  ;;  %v518_v20 = vpop.f32.mrb[35].mxu0 }
 0x127   :  { %1160 = vst.msk [vmem:[%s2584_s4 + $0x118] sm:$0xff] %vm667_vm2, %v1634_v19  ;;  %702 = vst.msk [vmem:[%s2583_s3 + $0x110] sm:$0xff] %vm667_vm2, %v518_v20  ;;  %v976_v21 = vpop.f32.mrb[35].mxu1 }
 0x128   :  { %1159 = vst.msk [vmem:[%s2584_s4 + $0x110] sm:$0xff] %vm667_vm2, %v976_v21 }
 0x129   :  { %v1531_v22 = vpop.f32.mrb[36].mxu0 }
 0x12a   :  { %705 = vst.msk [vmem:[%s2583_s3 + $0x128] sm:$0xff] %vm667_vm2, %v1531_v22  ;;  %v1637_v23 = vpop.f32.mrb[36].mxu1  ;;  %v528_v24 = vpop.f32.mrb[37].mxu0 }
 0x12b   :  { %1162 = vst.msk [vmem:[%s2584_s4 + $0x128] sm:$0xff] %vm667_vm2, %v1637_v23  ;;  %704 = vst.msk [vmem:[%s2583_s3 + $0x120] sm:$0xff] %vm667_vm2, %v528_v24  ;;  %v986_v25 = vpop.f32.mrb[37].mxu1 }
 0x12c   :  { %1161 = vst.msk [vmem:[%s2584_s4 + $0x120] sm:$0xff] %vm667_vm2, %v986_v25 }
 0x12d   :  { %v1534_v26 = vpop.f32.mrb[38].mxu0 }
 0x12e   :  { %707 = vst.msk [vmem:[%s2583_s3 + $0x138] sm:$0xff] %vm667_vm2, %v1534_v26  ;;  %v1640_v27 = vpop.f32.mrb[38].mxu1  ;;  %v538_v28 = vpop.f32.mrb[39].mxu0 }
 0x12f   :  { %1164 = vst.msk [vmem:[%s2584_s4 + $0x138] sm:$0xff] %vm667_vm2, %v1640_v27  ;;  %706 = vst.msk [vmem:[%s2583_s3 + $0x130] sm:$0xff] %vm667_vm2, %v538_v28  ;;  %v996_v29 = vpop.f32.mrb[39].mxu1 }
 0x130   :  { %1163 = vst.msk [vmem:[%s2584_s4 + $0x130] sm:$0xff] %vm667_vm2, %v996_v29 }
 0x131   :  { %v1537_v30 = vpop.f32.mrb[40].mxu0 }
 0x132   :  { %709 = vst.msk [vmem:[%s2583_s3 + $0x148] sm:$0xff] %vm667_vm2, %v1537_v30  ;;  %v1643_v31 = vpop.f32.mrb[40].mxu1  ;;  %v548_v32 = vpop.f32.mrb[41].mxu0 }
 0x133   :  { %1166 = vst.msk [vmem:[%s2584_s4 + $0x148] sm:$0xff] %vm667_vm2, %v1643_v31  ;;  %708 = vst.msk [vmem:[%s2583_s3 + $0x140] sm:$0xff] %vm667_vm2, %v548_v32  ;;  %v1006_v33 = vpop.f32.mrb[41].mxu1 }
 0x134   :  { %1165 = vst.msk [vmem:[%s2584_s4 + $0x140] sm:$0xff] %vm667_vm2, %v1006_v33 }
 0x135   :  { %v1540_v34 = vpop.f32.mrb[42].mxu0 }
 0x136   :  { %711 = vst.msk [vmem:[%s2583_s3 + $0x158] sm:$0xff] %vm667_vm2, %v1540_v34  ;;  %v1646_v35 = vpop.f32.mrb[42].mxu1  ;;  %v558_v36 = vpop.f32.mrb[43].mxu0 }
 0x137   :  { %1168 = vst.msk [vmem:[%s2584_s4 + $0x158] sm:$0xff] %vm667_vm2, %v1646_v35  ;;  %710 = vst.msk [vmem:[%s2583_s3 + $0x150] sm:$0xff] %vm667_vm2, %v558_v36  ;;  %v1016_v37 = vpop.f32.mrb[43].mxu1 }
 0x138   :  { %1167 = vst.msk [vmem:[%s2584_s4 + $0x150] sm:$0xff] %vm667_vm2, %v1016_v37 }
 0x139   :  { %v1543_v38 = vpop.f32.mrb[44].mxu0 }
 0x13a   :  { %713 = vst.msk [vmem:[%s2583_s3 + $0x168] sm:$0xff] %vm667_vm2, %v1543_v38  ;;  %v1649_v39 = vpop.f32.mrb[44].mxu1  ;;  %v568_v40 = vpop.f32.mrb[45].mxu0 }
 0x13b   :  { %1170 = vst.msk [vmem:[%s2584_s4 + $0x168] sm:$0xff] %vm667_vm2, %v1649_v39  ;;  %712 = vst.msk [vmem:[%s2583_s3 + $0x160] sm:$0xff] %vm667_vm2, %v568_v40  ;;  %v1026_v41 = vpop.f32.mrb[45].mxu1 }
 0x13c   :  { %1169 = vst.msk [vmem:[%s2584_s4 + $0x160] sm:$0xff] %vm667_vm2, %v1026_v41 }
 0x13d   :  { %v1546_v42 = vpop.f32.mrb[46].mxu0 }
 0x13e   :  { %715 = vst.msk [vmem:[%s2583_s3 + $0x178] sm:$0xff] %vm667_vm2, %v1546_v42  ;;  %v1652_v43 = vpop.f32.mrb[46].mxu1  ;;  %v578_v44 = vpop.f32.mrb[47].mxu0 }
 0x13f   :  { %1172 = vst.msk [vmem:[%s2584_s4 + $0x178] sm:$0xff] %vm667_vm2, %v1652_v43  ;;  %714 = vst.msk [vmem:[%s2583_s3 + $0x170] sm:$0xff] %vm667_vm2, %v578_v44  ;;  %v1036_v45 = vpop.f32.mrb[47].mxu1 }
 0x140   :  { %1171 = vst.msk [vmem:[%s2584_s4 + $0x170] sm:$0xff] %vm667_vm2, %v1036_v45 }
 0x141   :  { %v1549_v46 = vpop.f32.mrb[48].mxu0 }
 0x142   :  { %717 = vst.msk [vmem:[%s2583_s3 + $0x188] sm:$0xff] %vm667_vm2, %v1549_v46  ;;  %v1655_v47 = vpop.f32.mrb[48].mxu1  ;;  %v588_v48 = vpop.f32.mrb[49].mxu0 }
 0x143   :  { %1174 = vst.msk [vmem:[%s2584_s4 + $0x188] sm:$0xff] %vm667_vm2, %v1655_v47  ;;  %716 = vst.msk [vmem:[%s2583_s3 + $0x180] sm:$0xff] %vm667_vm2, %v588_v48  ;;  %v1046_v49 = vpop.f32.mrb[49].mxu1 }
 0x144   :  { %1173 = vst.msk [vmem:[%s2584_s4 + $0x180] sm:$0xff] %vm667_vm2, %v1046_v49 }
 0x145   :  { %v1552_v50 = vpop.f32.mrb[50].mxu0 }
 0x146   :  { %719 = vst.msk [vmem:[%s2583_s3 + $0x198] sm:$0xff] %vm667_vm2, %v1552_v50  ;;  %v1658_v51 = vpop.f32.mrb[50].mxu1  ;;  %v598_v52 = vpop.f32.mrb[51].mxu0 }
 0x147   :  { %1176 = vst.msk [vmem:[%s2584_s4 + $0x198] sm:$0xff] %vm667_vm2, %v1658_v51  ;;  %718 = vst.msk [vmem:[%s2583_s3 + $0x190] sm:$0xff] %vm667_vm2, %v598_v52  ;;  %v1056_v53 = vpop.f32.mrb[51].mxu1 }
 0x148   :  { %1175 = vst.msk [vmem:[%s2584_s4 + $0x190] sm:$0xff] %vm667_vm2, %v1056_v53 }
 0x149   :  { %v1555_v54 = vpop.f32.mrb[52].mxu0 }
 0x14a   :  { %721 = vst.msk [vmem:[%s2583_s3 + $0x1a8] sm:$0xff] %vm667_vm2, %v1555_v54  ;;  %v1661_v55 = vpop.f32.mrb[52].mxu1  ;;  %v608_v56 = vpop.f32.mrb[53].mxu0 }
 0x14b   :  { %1178 = vst.msk [vmem:[%s2584_s4 + $0x1a8] sm:$0xff] %vm667_vm2, %v1661_v55  ;;  %720 = vst.msk [vmem:[%s2583_s3 + $0x1a0] sm:$0xff] %vm667_vm2, %v608_v56  ;;  %v1066_v57 = vpop.f32.mrb[53].mxu1 }
 0x14c   :  { %1177 = vst.msk [vmem:[%s2584_s4 + $0x1a0] sm:$0xff] %vm667_vm2, %v1066_v57 }
 0x14d   :  { %v1558_v58 = vpop.f32.mrb[54].mxu0 }
 0x14e   :  { %723 = vst.msk [vmem:[%s2583_s3 + $0x1b8] sm:$0xff] %vm667_vm2, %v1558_v58  ;;  %v1664_v59 = vpop.f32.mrb[54].mxu1  ;;  %v618_v60 = vpop.f32.mrb[55].mxu0 }
 0x14f   :  { %1180 = vst.msk [vmem:[%s2584_s4 + $0x1b8] sm:$0xff] %vm667_vm2, %v1664_v59  ;;  %722 = vst.msk [vmem:[%s2583_s3 + $0x1b0] sm:$0xff] %vm667_vm2, %v618_v60  ;;  %v1076_v61 = vpop.f32.mrb[55].mxu1 }
 0x150   :  { %1179 = vst.msk [vmem:[%s2584_s4 + $0x1b0] sm:$0xff] %vm667_vm2, %v1076_v61 }
 0x151   :  { %v1561_v62 = vpop.f32.mrb[56].mxu0 }
 0x152   :  { %725 = vst.msk [vmem:[%s2583_s3 + $0x1c8] sm:$0xff] %vm667_vm2, %v1561_v62  ;;  %v1667_v63 = vpop.f32.mrb[56].mxu1  ;;  %v628_v0 = vpop.f32.mrb[57].mxu0 }
 0x153   :  { %1182 = vst.msk [vmem:[%s2584_s4 + $0x1c8] sm:$0xff] %vm667_vm2, %v1667_v63  ;;  %724 = vst.msk [vmem:[%s2583_s3 + $0x1c0] sm:$0xff] %vm667_vm2, %v628_v0  ;;  %v1086_v1 = vpop.f32.mrb[57].mxu1 }
 0x154   :  { %1181 = vst.msk [vmem:[%s2584_s4 + $0x1c0] sm:$0xff] %vm667_vm2, %v1086_v1 }
 0x155   :  { %v1564_v2 = vpop.f32.mrb[58].mxu0 }
 0x156   :  { %727 = vst.msk [vmem:[%s2583_s3 + $0x1d8] sm:$0xff] %vm667_vm2, %v1564_v2  ;;  %v1670_v3 = vpop.f32.mrb[58].mxu1  ;;  %v638_v4 = vpop.f32.mrb[59].mxu0 }
 0x157   :  { %1184 = vst.msk [vmem:[%s2584_s4 + $0x1d8] sm:$0xff] %vm667_vm2, %v1670_v3  ;;  %726 = vst.msk [vmem:[%s2583_s3 + $0x1d0] sm:$0xff] %vm667_vm2, %v638_v4  ;;  %v1096_v5 = vpop.f32.mrb[59].mxu1 }
 0x158   :  { %1183 = vst.msk [vmem:[%s2584_s4 + $0x1d0] sm:$0xff] %vm667_vm2, %v1096_v5 }
 0x159   :  { %v1567_v6 = vpop.f32.mrb[60].mxu0 }
 0x15a   :  { %729 = vst.msk [vmem:[%s2583_s3 + $0x1e8] sm:$0xff] %vm667_vm2, %v1567_v6  ;;  %v1673_v7 = vpop.f32.mrb[60].mxu1  ;;  %v648_v8 = vpop.f32.mrb[61].mxu0 }
 0x15b   :  { %1186 = vst.msk [vmem:[%s2584_s4 + $0x1e8] sm:$0xff] %vm667_vm2, %v1673_v7  ;;  %728 = vst.msk [vmem:[%s2583_s3 + $0x1e0] sm:$0xff] %vm667_vm2, %v648_v8  ;;  %v1106_v9 = vpop.f32.mrb[61].mxu1 }
 0x15c   :  { %1185 = vst.msk [vmem:[%s2584_s4 + $0x1e0] sm:$0xff] %vm667_vm2, %v1106_v9 }
 0x15d   :  { %v1570_v10 = vpop.f32.mrb[62].mxu0 }
 0x15e   :  { %731 = vst.msk [vmem:[%s2583_s3 + $0x1f8] sm:$0xff] %vm667_vm2, %v1570_v10  ;;  %v1676_v11 = vpop.f32.mrb[62].mxu1  ;;  %v658_v12 = vpop.f32.mrb[63].mxu0 }
 0x15f   :  { %1188 = vst.msk [vmem:[%s2584_s4 + $0x1f8] sm:$0xff] %vm667_vm2, %v1676_v11  ;;  %730 = vst.msk [vmem:[%s2583_s3 + $0x1f0] sm:$0xff] %vm667_vm2, %v658_v12  ;;  %v1116_v13 = vpop.f32.mrb[63].mxu1 }
 0x160   :  { %1187 = vst.msk [vmem:[%s2584_s4 + $0x1f0] sm:$0xff] %vm667_vm2, %v1116_v13 }

</bundles_post_ra>
